<compile_context>
chip_gen: v6e
topology: v6e:2x2x1
jax: 0.10.0
libtpu: 0.0.40
codegen_flags: <defaults>
</compile_context>

<pallas_src>
import jax
import jax.numpy as jnp
from jax.experimental import pallas as pl
from jax.experimental.pallas import tpu as pltpu


def _add_relu_kernel(a_ref, b_ref, o_ref):
    # Elementwise hot path: add + ReLU fused in VMEM (scalar 0 constant, no
    # broadcasted zero tile).
    o_ref[...] = jnp.maximum(a_ref[...] + b_ref[...], 0.0)


def _pick_layout(total_elems, max_tile_rows):
    """Choose (tile_rows, cols, padded_rows) for a lane-dense 2D slab."""
    cols = 1024 if total_elems >= 8 * 1024 else 128
    rows = -(-total_elems // cols)  # cdiv
    max_tile = max(8, (max_tile_rows // 8) * 8)
    if rows <= max_tile:
        # Single block along rows (block dim == full dim, no (8,128) issue).
        return rows, cols, rows
    # Prefer a multiple-of-8 divisor of rows so no padding is needed at all.
    min_accept = max(8, max_tile // 8)
    for t in range(max_tile, min_accept - 1, -8):
        if rows % t == 0:
            return t, cols, rows
    # Fall back: pad rows up to a multiple of max_tile (single flat pad).
    padded_rows = -(-rows // max_tile) * max_tile
    return max_tile, cols, padded_rows


def add_relu(x, y, *, max_tile_rows=512):
    """relu(x + y), matching M.forward(x250, x242)."""
    assert x.shape == y.shape and x.dtype == y.dtype
    orig_shape = x.shape
    dtype = x.dtype

    total = 1
    for d in orig_shape:
        total *= d

    tile_rows, cols, padded_rows = _pick_layout(total, max_tile_rows)
    padded_total = padded_rows * cols

    a = x.reshape(-1)
    b = y.reshape(-1)
    if padded_total != total:
        pad = padded_total - total
        a = jnp.pad(a, (0, pad))
        b = jnp.pad(b, (0, pad))
    a2 = a.reshape(padded_rows, cols)
    b2 = b.reshape(padded_rows, cols)

    grid = (padded_rows // tile_rows,)
    spec = pl.BlockSpec((tile_rows, cols), lambda i: (i, 0))

    out2 = pl.pallas_call(
        _add_relu_kernel,
        out_shape=jax.ShapeDtypeStruct((padded_rows, cols), dtype),
        grid=grid,
        in_specs=[spec, spec],
        out_specs=spec,
        compiler_params=pltpu.CompilerParams(
            dimension_semantics=("parallel",)
        ),
    )(a2, b2)

    out_flat = out2.reshape(-1)
    if padded_total != total:
        out_flat = out_flat[:total]
    return out_flat.reshape(orig_shape)


if __name__ == "__main__":
    key = jax.random.PRNGKey(0)
    k1, k2 = jax.random.split(key)

    # Small shape consistent with the module's NCHW elementwise forward
    # (original module uses (1, 1024, 28, 28)).
    shape = (1, 64, 28, 28)
    x250 = jax.random.normal(k1, shape, dtype=jnp.float32)
    x242 = jax.random.normal(k2, shape, dtype=jnp.float32)

    ref = jnp.maximum(x250 + x242, 0.0)

    # Pad-free, lane-dense path (rows = 49, single 49x1024 block).
    out = add_relu(x250, x242)
    jax.block_until_ready(out)
    assert out.shape == shape and out.dtype == jnp.float32
    assert jnp.allclose(out, ref), "mismatch vs reference"

    # Also exercise the multi-block (tiled + minimal flat-pad) path.
    out_tiled = add_relu(x250, x242, max_tile_rows=16)
    jax.block_until_ready(out_tiled)
    assert jnp.allclose(out_tiled, ref), "mismatch vs reference (tiled path)"

    print("KERNEL_OK")
</pallas_src>

<mosaic_0001>
module attributes {stable_mosaic.version = 11 : i64} {
  func.func @_add_relu_kernel(%arg0: i32, %arg1: memref<49x1024xf32, #tpu.memory_space<vmem>>, %arg2: memref<49x1024xf32, #tpu.memory_space<vmem>>, %arg3: memref<49x1024xf32, #tpu.memory_space<vmem>>) attributes {dimension_semantics = [#tpu.dimension_semantics<parallel>], iteration_bounds = array<i64: 1>, scalar_prefetch = 0 : i64, scratch_operands = 0 : i64, tpu.core_type = #tpu.core_type<tc>, window_params = [{transform_indices = @transform_0, window_bounds = array<i64: 49, 1024>}, {transform_indices = @transform_1, window_bounds = array<i64: 49, 1024>}, {transform_indices = @transform_2, window_bounds = array<i64: 49, 1024>}]} {
    %c0 = arith.constant 0 : index
    %c0_0 = arith.constant 0 : index
    %0 = vector.load %arg1[%c0, %c0_0] : memref<49x1024xf32, #tpu.memory_space<vmem>>, vector<49x1024xf32>
    %c0_1 = arith.constant 0 : index
    %c0_2 = arith.constant 0 : index
    %1 = vector.load %arg2[%c0_1, %c0_2] : memref<49x1024xf32, #tpu.memory_space<vmem>>, vector<49x1024xf32>
    %2 = arith.addf %0, %1 : vector<49x1024xf32>
    %cst = arith.constant 0.000000e+00 : f32
    %3 = vector.broadcast %cst : f32 to vector<49x1024xf32>
    %4 = arith.maximumf %2, %3 : vector<49x1024xf32>
    %c0_3 = arith.constant 0 : index
    %c0_4 = arith.constant 0 : index
    %5 = vector.load %arg3[%c0_3, %c0_4] : memref<49x1024xf32, #tpu.memory_space<vmem>>, vector<49x1024xf32>
    tpu.vector_store %arg3[%c0_3, %c0_4], %4 {strides = array<i32>} : memref<49x1024xf32, #tpu.memory_space<vmem>>, vector<49x1024xf32>,
    return
  }
  func.func @transform_0(%arg0: i32) -> (i32, i32) {
    %c0_i32 = arith.constant 0 : i32
    %c0_i32_0 = arith.constant 0 : i32
    return %arg0, %c0_i32 : i32, i32
  }
  func.func @transform_1(%arg0: i32) -> (i32, i32) {
    %c0_i32 = arith.constant 0 : i32
    %c0_i32_0 = arith.constant 0 : i32
    return %arg0, %c0_i32 : i32, i32
  }
  func.func @transform_2(%arg0: i32) -> (i32, i32) {
    %c0_i32 = arith.constant 0 : i32
    %c0_i32_0 = arith.constant 0 : i32
    return %arg0, %c0_i32 : i32, i32
  }
}

</mosaic_0001>

<bundles_post_ra>
// kernel: tpu_custom_call.1
= control target key start
LH: loop header
LB: loop body
LE: loop exit
PB: predicated region body
PF: predicated region fallthrough
CT: control target
= control target key end

     0   :  { %7 = vsyncpa [#allocation3], 0  ;;  %s447_s0 = inlined_call_operand.hbm [shape: f32[49,1024], index: 0, kind: input, shape index: {}]   ;;  %s448_s1 = inlined_call_operand.hbm [shape: f32[49,1024], index: 1, kind: input, shape index: {}]   ;;  %s449_s2 = inlined_call_operand.hbm [shape: f32[49,1024], index: 2, kind: output, shape index: {}]  }
   0x1   :  { %8 = vsyncpa [#allocation6], 0 }
   0x2   :  { %9 = vsyncpa [#allocation4], 0  ;;  %s409_s9 = smov [#allocation2]  }
   0x3   :  { %s15_s10 = sshll.u32 %s409_s9, 4  ;;  %s16_s10 = int_to_ptr.vmem [resolvable:$true] %s15_s10 }
   0x4   :  { %s351_s11 = scalar_lea.vmem %s16_s10, 7168  ;;  %p356_p1 = scmp.lt.s32.totalorder %s16_s10, %s16_s10 }
   0x5   :  { %p352_p0 = scmp.ne.s32.totalorder %s16_s10, %s351_s11  ;;  %p357_p2 = scmp.lt.s32.totalorder %s351_s11, %s351_s11 }
   0x7   :  { %p358_p3 = por %p357_p2, %p356_p1 }
   0x9   :  { %p359_p4 = pnand %p358_p3, %p352_p0 }
   0xb   :  { %362 = shalt.err (!%p359_p4)
}
   0xc   :  { %s410_s12 = smov 1024   ;;  %s411_s13 = smov 64  }
   0xd   :  { %21 = dma.hbm_to_vmem [thread:$0]  %s447_s0, 7168, %s16_s10, [#allocation3], %s410_s12, %s410_s12, %s411_s13  }
   0xe   :  { %s412_s16 = smov [#allocation5]  }
   0xf   :  { %s27_s17 = sshll.u32 %s412_s16, 4  ;;  %s28_s17 = int_to_ptr.vmem [resolvable:$true] %s27_s17 }
  0x10   :  { %s371_s18 = scalar_lea.vmem %s28_s17, 7168  ;;  %p376_p6 = scmp.lt.s32.totalorder %s28_s17, %s28_s17 }
  0x11   :  { %p372_p5 = scmp.ne.s32.totalorder %s28_s17, %s371_s18  ;;  %p377_p7 = scmp.lt.s32.totalorder %s371_s18, %s371_s18 }
  0x13   :  { %p378_p8 = por %p377_p7, %p376_p6 }
  0x15   :  { %p379_p9 = pnand %p378_p8, %p372_p5 }
  0x17   :  { %382 = shalt.err (!%p379_p9)
}
  0x18   :  { %33 = dma.hbm_to_vmem [thread:$0]  %s448_s1, 7168, %s28_s17, [#allocation6], %s410_s12, %s410_s12, %s411_s13  }
  0x19   :  { %403 = dma.done.wait [#allocation3], 7168  }
  0x1a   :  { %404 = vsyncadd [#allocation3], 4294960128 }
  0x1b   :  { %405 = dma.done.wait [#allocation6], 7168  }
  0x1c   :  { %406 = vsyncadd [#allocation6], 4294960128  ;;  %v40_v0 = vld [vmem:[#allocation2] sm:$0xff]  ;;  %v41_v2 = vld [vmem:[#allocation2 + $0x8] sm:$0xff]  ;;  %s413_s0 = smov [#allocation7]  }
  0x1d   :  { %v96_v1 = vld [vmem:[#allocation5] sm:$0xff]  ;;  %v97_v4 = vld [vmem:[#allocation5 + $0x8] sm:$0xff]  ;;  %v42_v5 = vld [vmem:[#allocation2 + $0x10] sm:$0xff]  ;;  %s325_s1 = sshll.u32 %s413_s0, 4  ;;  %s326_s1 = int_to_ptr.vmem [resolvable:$true] %s325_s1 }
  0x1e   :  { %v152_v3 = vadd.f32 %v96_v1, %v40_v0  ;;  %v98_v6 = vld [vmem:[#allocation5 + $0x10] sm:$0xff]  ;;  %v153_v7 = vadd.f32 %v97_v4, %v41_v2  ;;  %v43_v9 = vld [vmem:[#allocation2 + $0x18] sm:$0xff]  ;;  %v44_v11 = vld [vmem:[#allocation2 + $0x20] sm:$0xff]  ;;  %s383_s21 = scalar_lea.vmem %s326_s1, 7168  ;;  %p388_p11 = scmp.lt.s32.totalorder %s326_s1, %s326_s1 }
  0x1f   :  { %v154_v8 = vadd.f32 %v98_v6, %v42_v5  ;;  %v99_v10 = vld [vmem:[#allocation5 + $0x18] sm:$0xff]  ;;  %v100_v14 = vld [vmem:[#allocation5 + $0x20] sm:$0xff]  ;;  %v45_v15 = vld [vmem:[#allocation2 + $0x28] sm:$0xff]  ;;  %p384_p10 = scmp.ne.s32.totalorder %s326_s1, %s383_s21  ;;  %p389_p12 = scmp.lt.s32.totalorder %s383_s21, %s383_s21 }
  0x20   :  { %v208_v12 = vmax.f32 %v152_v3, 0.0  ;;  %v155_v13 = vadd.f32 %v99_v10, %v43_v9  ;;  %v101_v16 = vld [vmem:[#allocation5 + $0x28] sm:$0xff]  ;;  %v209_v17 = vmax.f32 %v153_v7, 0.0  ;;  %v156_v19 = vadd.f32 %v100_v14, %v44_v11  ;;  %v46_v21 = vld [vmem:[#allocation2 + $0x30] sm:$0xff]  ;;  %v47_v23 = vld [vmem:[#allocation2 + $0x38] sm:$0xff] }
  0x21   :  { %v210_v18 = vmax.f32 %v154_v8, 0.0  ;;  %v157_v20 = vadd.f32 %v101_v16, %v45_v15  ;;  %v102_v22 = vld [vmem:[#allocation5 + $0x30] sm:$0xff]  ;;  %v103_v26 = vld [vmem:[#allocation5 + $0x38] sm:$0xff]  ;;  %v48_v27 = vld [vmem:[#allocation2 + $0x40] sm:$0xff]  ;;  %p390_p13 = por %p389_p12, %p388_p11 }
  0x22   :  { %264 = vst [vmem:[#allocation7] sm:$0xff] %v208_v12  ;;  %v211_v24 = vmax.f32 %v155_v13, 0.0  ;;  %v158_v25 = vadd.f32 %v102_v22, %v46_v21  ;;  %v104_v28 = vld [vmem:[#allocation5 + $0x40] sm:$0xff]  ;;  %265 = vst [vmem:[#allocation7 + $0x8] sm:$0xff] %v209_v17  ;;  %v212_v29 = vmax.f32 %v156_v19, 0.0  ;;  %v159_v31 = vadd.f32 %v103_v26, %v47_v23  ;;  %v49_v33 = vld [vmem:[#allocation2 + $0x48] sm:$0xff] }
  0x23   :  { %266 = vst [vmem:[#allocation7 + $0x10] sm:$0xff] %v210_v18  ;;  %v213_v30 = vmax.f32 %v157_v20, 0.0  ;;  %v160_v32 = vadd.f32 %v104_v28, %v48_v27  ;;  %v105_v34 = vld [vmem:[#allocation5 + $0x48] sm:$0xff]  ;;  %v50_v35 = vld [vmem:[#allocation2 + $0x50] sm:$0xff]  ;;  %v51_v39 = vld [vmem:[#allocation2 + $0x58] sm:$0xff]  ;;  %p391_p0 = pnand %p390_p13, %p384_p10 }
  0x24   :  { %267 = vst [vmem:[#allocation7 + $0x18] sm:$0xff] %v211_v24  ;;  %v214_v36 = vmax.f32 %v158_v25, 0.0  ;;  %v161_v37 = vadd.f32 %v105_v34, %v49_v33  ;;  %v106_v38 = vld [vmem:[#allocation5 + $0x50] sm:$0xff]  ;;  %v107_v40 = vld [vmem:[#allocation5 + $0x58] sm:$0xff]  ;;  %268 = vst [vmem:[#allocation7 + $0x20] sm:$0xff] %v212_v29  ;;  %v215_v41 = vmax.f32 %v159_v31, 0.0 }
  0x25   :  { %269 = vst [vmem:[#allocation7 + $0x28] sm:$0xff] %v213_v30  ;;  %v216_v42 = vmax.f32 %v160_v32, 0.0  ;;  %v162_v43 = vadd.f32 %v106_v38, %v50_v35  ;;  %v163_v44 = vadd.f32 %v107_v40, %v51_v39  ;;  %v52_v45 = vld [vmem:[#allocation2 + $0x60] sm:$0xff]  ;;  %v53_v47 = vld [vmem:[#allocation2 + $0x68] sm:$0xff]  ;;  %v54_v51 = vld [vmem:[#allocation2 + $0x70] sm:$0xff] }
  0x26   :  { %v108_v46 = vld [vmem:[#allocation5 + $0x60] sm:$0xff]  ;;  %270 = vst [vmem:[#allocation7 + $0x30] sm:$0xff] %v214_v36  ;;  %v217_v48 = vmax.f32 %v161_v37, 0.0  ;;  %v109_v50 = vld [vmem:[#allocation5 + $0x68] sm:$0xff]  ;;  %v110_v52 = vld [vmem:[#allocation5 + $0x70] sm:$0xff] }
  0x27   :  { %v164_v49 = vadd.f32 %v108_v46, %v52_v45  ;;  %271 = vst [vmem:[#allocation7 + $0x38] sm:$0xff] %v215_v41  ;;  %272 = vst [vmem:[#allocation7 + $0x40] sm:$0xff] %v216_v42  ;;  %v218_v53 = vmax.f32 %v162_v43, 0.0  ;;  %v219_v54 = vmax.f32 %v163_v44, 0.0  ;;  %v165_v55 = vadd.f32 %v109_v50, %v53_v47  ;;  %v55_v57 = vld [vmem:[#allocation2 + $0x78] sm:$0xff]  ;;  %v56_v59 = vld [vmem:[#allocation2 + $0x80] sm:$0xff] }
  0x28   :  { %v166_v56 = vadd.f32 %v110_v52, %v54_v51  ;;  %v111_v58 = vld [vmem:[#allocation5 + $0x78] sm:$0xff]  ;;  %273 = vst [vmem:[#allocation7 + $0x48] sm:$0xff] %v217_v48  ;;  %v112_v62 = vld [vmem:[#allocation5 + $0x80] sm:$0xff]  ;;  %v57_v63 = vld [vmem:[#allocation2 + $0x88] sm:$0xff] }
  0x29   :  { %v220_v60 = vmax.f32 %v164_v49, 0.0  ;;  %v167_v61 = vadd.f32 %v111_v58, %v55_v57  ;;  %v113_v0 = vld [vmem:[#allocation5 + $0x88] sm:$0xff]  ;;  %274 = vst [vmem:[#allocation7 + $0x50] sm:$0xff] %v218_v53  ;;  %275 = vst [vmem:[#allocation7 + $0x58] sm:$0xff] %v219_v54  ;;  %v221_v1 = vmax.f32 %v165_v55, 0.0  ;;  %v168_v3 = vadd.f32 %v112_v62, %v56_v59  ;;  %v58_v5 = vld [vmem:[#allocation2 + $0x90] sm:$0xff] }
  0x2a   :  { %v222_v2 = vmax.f32 %v166_v56, 0.0  ;;  %v169_v4 = vadd.f32 %v113_v0, %v57_v63  ;;  %v114_v6 = vld [vmem:[#allocation5 + $0x90] sm:$0xff]  ;;  %v59_v7 = vld [vmem:[#allocation2 + $0x98] sm:$0xff]  ;;  %v60_v11 = vld [vmem:[#allocation2 + $0xa0] sm:$0xff] }
  0x2b   :  { %276 = vst [vmem:[#allocation7 + $0x60] sm:$0xff] %v220_v60  ;;  %v223_v8 = vmax.f32 %v167_v61, 0.0  ;;  %v170_v9 = vadd.f32 %v114_v6, %v58_v5  ;;  %v115_v10 = vld [vmem:[#allocation5 + $0x98] sm:$0xff]  ;;  %v116_v12 = vld [vmem:[#allocation5 + $0xa0] sm:$0xff]  ;;  %277 = vst [vmem:[#allocation7 + $0x68] sm:$0xff] %v221_v1  ;;  %v224_v13 = vmax.f32 %v168_v3, 0.0 }
  0x2c   :  { %278 = vst [vmem:[#allocation7 + $0x70] sm:$0xff] %v222_v2  ;;  %v225_v14 = vmax.f32 %v169_v4, 0.0  ;;  %v171_v15 = vadd.f32 %v115_v10, %v59_v7  ;;  %v172_v16 = vadd.f32 %v116_v12, %v60_v11  ;;  %v61_v17 = vld [vmem:[#allocation2 + $0xa8] sm:$0xff]  ;;  %v62_v19 = vld [vmem:[#allocation2 + $0xb0] sm:$0xff]  ;;  %v63_v23 = vld [vmem:[#allocation2 + $0xb8] sm:$0xff] }
  0x2d   :  { %v117_v18 = vld [vmem:[#allocation5 + $0xa8] sm:$0xff]  ;;  %279 = vst [vmem:[#allocation7 + $0x78] sm:$0xff] %v223_v8  ;;  %v226_v20 = vmax.f32 %v170_v9, 0.0  ;;  %v118_v22 = vld [vmem:[#allocation5 + $0xb0] sm:$0xff]  ;;  %v119_v24 = vld [vmem:[#allocation5 + $0xb8] sm:$0xff] }
  0x2e   :  { %v173_v21 = vadd.f32 %v117_v18, %v61_v17  ;;  %280 = vst [vmem:[#allocation7 + $0x80] sm:$0xff] %v224_v13  ;;  %281 = vst [vmem:[#allocation7 + $0x88] sm:$0xff] %v225_v14  ;;  %v227_v25 = vmax.f32 %v171_v15, 0.0  ;;  %v228_v26 = vmax.f32 %v172_v16, 0.0  ;;  %v174_v27 = vadd.f32 %v118_v22, %v62_v19  ;;  %v64_v29 = vld [vmem:[#allocation2 + $0xc0] sm:$0xff]  ;;  %v65_v31 = vld [vmem:[#allocation2 + $0xc8] sm:$0xff] }
  0x2f   :  { %v175_v28 = vadd.f32 %v119_v24, %v63_v23  ;;  %v120_v30 = vld [vmem:[#allocation5 + $0xc0] sm:$0xff]  ;;  %282 = vst [vmem:[#allocation7 + $0x90] sm:$0xff] %v226_v20  ;;  %v121_v34 = vld [vmem:[#allocation5 + $0xc8] sm:$0xff]  ;;  %v66_v35 = vld [vmem:[#allocation2 + $0xd0] sm:$0xff] }
  0x30   :  { %v229_v32 = vmax.f32 %v173_v21, 0.0  ;;  %v176_v33 = vadd.f32 %v120_v30, %v64_v29  ;;  %v122_v36 = vld [vmem:[#allocation5 + $0xd0] sm:$0xff]  ;;  %283 = vst [vmem:[#allocation7 + $0x98] sm:$0xff] %v227_v25  ;;  %284 = vst [vmem:[#allocation7 + $0xa0] sm:$0xff] %v228_v26  ;;  %v230_v37 = vmax.f32 %v174_v27, 0.0  ;;  %v177_v39 = vadd.f32 %v121_v34, %v65_v31  ;;  %v67_v41 = vld [vmem:[#allocation2 + $0xd8] sm:$0xff] }
  0x31   :  { %v231_v38 = vmax.f32 %v175_v28, 0.0  ;;  %v178_v40 = vadd.f32 %v122_v36, %v66_v35  ;;  %v123_v42 = vld [vmem:[#allocation5 + $0xd8] sm:$0xff]  ;;  %v68_v43 = vld [vmem:[#allocation2 + $0xe0] sm:$0xff]  ;;  %v69_v47 = vld [vmem:[#allocation2 + $0xe8] sm:$0xff] }
  0x32   :  { %285 = vst [vmem:[#allocation7 + $0xa8] sm:$0xff] %v229_v32  ;;  %v232_v44 = vmax.f32 %v176_v33, 0.0  ;;  %v179_v45 = vadd.f32 %v123_v42, %v67_v41  ;;  %v124_v46 = vld [vmem:[#allocation5 + $0xe0] sm:$0xff]  ;;  %v125_v48 = vld [vmem:[#allocation5 + $0xe8] sm:$0xff]  ;;  %286 = vst [vmem:[#allocation7 + $0xb0] sm:$0xff] %v230_v37  ;;  %v233_v49 = vmax.f32 %v177_v39, 0.0 }
  0x33   :  { %287 = vst [vmem:[#allocation7 + $0xb8] sm:$0xff] %v231_v38  ;;  %v234_v50 = vmax.f32 %v178_v40, 0.0  ;;  %v180_v51 = vadd.f32 %v124_v46, %v68_v43  ;;  %v181_v52 = vadd.f32 %v125_v48, %v69_v47  ;;  %v70_v53 = vld [vmem:[#allocation2 + $0xf0] sm:$0xff]  ;;  %v71_v55 = vld [vmem:[#allocation2 + $0xf8] sm:$0xff]  ;;  %v72_v59 = vld [vmem:[#allocation2 + $0x100] sm:$0xff] }
  0x34   :  { %v126_v54 = vld [vmem:[#allocation5 + $0xf0] sm:$0xff]  ;;  %288 = vst [vmem:[#allocation7 + $0xc0] sm:$0xff] %v232_v44  ;;  %v235_v56 = vmax.f32 %v179_v45, 0.0  ;;  %v127_v58 = vld [vmem:[#allocation5 + $0xf8] sm:$0xff]  ;;  %v128_v60 = vld [vmem:[#allocation5 + $0x100] sm:$0xff] }
  0x35   :  { %v182_v57 = vadd.f32 %v126_v54, %v70_v53  ;;  %289 = vst [vmem:[#allocation7 + $0xc8] sm:$0xff] %v233_v49  ;;  %290 = vst [vmem:[#allocation7 + $0xd0] sm:$0xff] %v234_v50  ;;  %v236_v61 = vmax.f32 %v180_v51, 0.0  ;;  %v237_v62 = vmax.f32 %v181_v52, 0.0  ;;  %v183_v63 = vadd.f32 %v127_v58, %v71_v55  ;;  %v73_v1 = vld [vmem:[#allocation2 + $0x108] sm:$0xff]  ;;  %v74_v3 = vld [vmem:[#allocation2 + $0x110] sm:$0xff] }
  0x36   :  { %v184_v0 = vadd.f32 %v128_v60, %v72_v59  ;;  %v129_v2 = vld [vmem:[#allocation5 + $0x108] sm:$0xff]  ;;  %291 = vst [vmem:[#allocation7 + $0xd8] sm:$0xff] %v235_v56  ;;  %v130_v6 = vld [vmem:[#allocation5 + $0x110] sm:$0xff]  ;;  %v75_v7 = vld [vmem:[#allocation2 + $0x118] sm:$0xff] }
  0x37   :  { %v238_v4 = vmax.f32 %v182_v57, 0.0  ;;  %v185_v5 = vadd.f32 %v129_v2, %v73_v1  ;;  %v131_v8 = vld [vmem:[#allocation5 + $0x118] sm:$0xff]  ;;  %292 = vst [vmem:[#allocation7 + $0xe0] sm:$0xff] %v236_v61  ;;  %293 = vst [vmem:[#allocation7 + $0xe8] sm:$0xff] %v237_v62  ;;  %v239_v9 = vmax.f32 %v183_v63, 0.0  ;;  %v186_v11 = vadd.f32 %v130_v6, %v74_v3  ;;  %v76_v13 = vld [vmem:[#allocation2 + $0x120] sm:$0xff] }
  0x38   :  { %v240_v10 = vmax.f32 %v184_v0, 0.0  ;;  %v187_v12 = vadd.f32 %v131_v8, %v75_v7  ;;  %v132_v14 = vld [vmem:[#allocation5 + $0x120] sm:$0xff]  ;;  %v77_v15 = vld [vmem:[#allocation2 + $0x128] sm:$0xff]  ;;  %v78_v19 = vld [vmem:[#allocation2 + $0x130] sm:$0xff] }
  0x39   :  { %294 = vst [vmem:[#allocation7 + $0xf0] sm:$0xff] %v238_v4  ;;  %v241_v16 = vmax.f32 %v185_v5, 0.0  ;;  %v188_v17 = vadd.f32 %v132_v14, %v76_v13  ;;  %v133_v18 = vld [vmem:[#allocation5 + $0x128] sm:$0xff]  ;;  %v134_v20 = vld [vmem:[#allocation5 + $0x130] sm:$0xff]  ;;  %295 = vst [vmem:[#allocation7 + $0xf8] sm:$0xff] %v239_v9  ;;  %v242_v21 = vmax.f32 %v186_v11, 0.0 }
  0x3a   :  { %296 = vst [vmem:[#allocation7 + $0x100] sm:$0xff] %v240_v10  ;;  %v243_v22 = vmax.f32 %v187_v12, 0.0  ;;  %v189_v23 = vadd.f32 %v133_v18, %v77_v15  ;;  %v190_v24 = vadd.f32 %v134_v20, %v78_v19  ;;  %v79_v25 = vld [vmem:[#allocation2 + $0x138] sm:$0xff]  ;;  %v80_v27 = vld [vmem:[#allocation2 + $0x140] sm:$0xff]  ;;  %v81_v31 = vld [vmem:[#allocation2 + $0x148] sm:$0xff] }
  0x3b   :  { %v135_v26 = vld [vmem:[#allocation5 + $0x138] sm:$0xff]  ;;  %297 = vst [vmem:[#allocation7 + $0x108] sm:$0xff] %v241_v16  ;;  %v244_v28 = vmax.f32 %v188_v17, 0.0  ;;  %v136_v30 = vld [vmem:[#allocation5 + $0x140] sm:$0xff]  ;;  %v137_v32 = vld [vmem:[#allocation5 + $0x148] sm:$0xff] }
  0x3c   :  { %v191_v29 = vadd.f32 %v135_v26, %v79_v25  ;;  %298 = vst [vmem:[#allocation7 + $0x110] sm:$0xff] %v242_v21  ;;  %299 = vst [vmem:[#allocation7 + $0x118] sm:$0xff] %v243_v22  ;;  %v245_v33 = vmax.f32 %v189_v23, 0.0  ;;  %v246_v34 = vmax.f32 %v190_v24, 0.0  ;;  %v192_v35 = vadd.f32 %v136_v30, %v80_v27  ;;  %v82_v37 = vld [vmem:[#allocation2 + $0x150] sm:$0xff]  ;;  %v83_v39 = vld [vmem:[#allocation2 + $0x158] sm:$0xff] }
  0x3d   :  { %v193_v36 = vadd.f32 %v137_v32, %v81_v31  ;;  %v138_v38 = vld [vmem:[#allocation5 + $0x150] sm:$0xff]  ;;  %300 = vst [vmem:[#allocation7 + $0x120] sm:$0xff] %v244_v28  ;;  %v139_v42 = vld [vmem:[#allocation5 + $0x158] sm:$0xff]  ;;  %v84_v43 = vld [vmem:[#allocation2 + $0x160] sm:$0xff] }
  0x3e   :  { %v247_v40 = vmax.f32 %v191_v29, 0.0  ;;  %v194_v41 = vadd.f32 %v138_v38, %v82_v37  ;;  %v140_v44 = vld [vmem:[#allocation5 + $0x160] sm:$0xff]  ;;  %301 = vst [vmem:[#allocation7 + $0x128] sm:$0xff] %v245_v33  ;;  %302 = vst [vmem:[#allocation7 + $0x130] sm:$0xff] %v246_v34  ;;  %v248_v45 = vmax.f32 %v192_v35, 0.0  ;;  %v195_v47 = vadd.f32 %v139_v42, %v83_v39  ;;  %v85_v49 = vld [vmem:[#allocation2 + $0x168] sm:$0xff] }
  0x3f   :  { %v249_v46 = vmax.f32 %v193_v36, 0.0  ;;  %v196_v48 = vadd.f32 %v140_v44, %v84_v43  ;;  %v141_v50 = vld [vmem:[#allocation5 + $0x168] sm:$0xff]  ;;  %v86_v51 = vld [vmem:[#allocation2 + $0x170] sm:$0xff]  ;;  %v87_v55 = vld [vmem:[#allocation2 + $0x178] sm:$0xff] }
  0x40   :  { %303 = vst [vmem:[#allocation7 + $0x138] sm:$0xff] %v247_v40  ;;  %v250_v52 = vmax.f32 %v194_v41, 0.0  ;;  %v197_v53 = vadd.f32 %v141_v50, %v85_v49  ;;  %v142_v54 = vld [vmem:[#allocation5 + $0x170] sm:$0xff]  ;;  %v143_v56 = vld [vmem:[#allocation5 + $0x178] sm:$0xff]  ;;  %304 = vst [vmem:[#allocation7 + $0x140] sm:$0xff] %v248_v45  ;;  %v251_v57 = vmax.f32 %v195_v47, 0.0 }
  0x41   :  { %305 = vst [vmem:[#allocation7 + $0x148] sm:$0xff] %v249_v46  ;;  %v252_v58 = vmax.f32 %v196_v48, 0.0  ;;  %v198_v59 = vadd.f32 %v142_v54, %v86_v51  ;;  %v199_v60 = vadd.f32 %v143_v56, %v87_v55  ;;  %v88_v61 = vld [vmem:[#allocation2 + $0x180] sm:$0x1]  ;;  %v89_v1 = vld [vmem:[#allocation2 + $0x188] sm:$0x1] }
  0x42   :  { %v144_v62 = vld [vmem:[#allocation5 + $0x180] sm:$0x1]  ;;  %306 = vst [vmem:[#allocation7 + $0x150] sm:$0xff] %v250_v52  ;;  %v253_v63 = vmax.f32 %v197_v53, 0.0  ;;  %v145_v2 = vld [vmem:[#allocation5 + $0x188] sm:$0x1] }
  0x43   :  { %v200_v0 = vadd.f32 %v144_v62, %v88_v61  ;;  %307 = vst [vmem:[#allocation7 + $0x158] sm:$0xff] %v251_v57  ;;  %308 = vst [vmem:[#allocation7 + $0x160] sm:$0xff] %v252_v58  ;;  %v254_v3 = vmax.f32 %v198_v59, 0.0  ;;  %v255_v4 = vmax.f32 %v199_v60, 0.0  ;;  %v201_v5 = vadd.f32 %v145_v2, %v89_v1  ;;  %v90_v6 = vld [vmem:[#allocation2 + $0x190] sm:$0x1] }
  0x44   :  { %v146_v7 = vld [vmem:[#allocation5 + $0x190] sm:$0x1]  ;;  %309 = vst [vmem:[#allocation7 + $0x168] sm:$0xff] %v253_v63  ;;  %v91_v10 = vld [vmem:[#allocation2 + $0x198] sm:$0x1] }
  0x45   :  { %v256_v8 = vmax.f32 %v200_v0, 0.0  ;;  %v202_v9 = vadd.f32 %v146_v7, %v90_v6  ;;  %v147_v11 = vld [vmem:[#allocation5 + $0x198] sm:$0x1]  ;;  %310 = vst [vmem:[#allocation7 + $0x170] sm:$0xff] %v254_v3  ;;  %311 = vst [vmem:[#allocation7 + $0x178] sm:$0xff] %v255_v4  ;;  %v257_v12 = vmax.f32 %v201_v5, 0.0 }
  0x46   :  { %v203_v13 = vadd.f32 %v147_v11, %v91_v10  ;;  %v92_v14 = vld [vmem:[#allocation2 + $0x1a0] sm:$0x1]  ;;  %v93_v18 = vld [vmem:[#allocation2 + $0x1a8] sm:$0x1]  ;;  %v94_v22 = vld [vmem:[#allocation2 + $0x1b0] sm:$0x1] }
  0x47   :  { %v148_v15 = vld [vmem:[#allocation5 + $0x1a0] sm:$0x1]  ;;  %312 = vst [vmem:[#allocation7 + $0x180] sm:$0x1] %v256_v8  ;;  %v258_v16 = vmax.f32 %v202_v9, 0.0 }
  0x48   :  { %v204_v17 = vadd.f32 %v148_v15, %v92_v14  ;;  %v149_v19 = vld [vmem:[#allocation5 + $0x1a8] sm:$0x1]  ;;  %313 = vst [vmem:[#allocation7 + $0x188] sm:$0x1] %v257_v12  ;;  %v259_v20 = vmax.f32 %v203_v13, 0.0 }
  0x49   :  { %v205_v21 = vadd.f32 %v149_v19, %v93_v18  ;;  %v150_v23 = vld [vmem:[#allocation5 + $0x1b0] sm:$0x1]  ;;  %314 = vst [vmem:[#allocation7 + $0x190] sm:$0x1] %v258_v16  ;;  %v95_v26 = vld [vmem:[#allocation2 + $0x1b8] sm:$0x1] }
  0x4a   :  { %v260_v24 = vmax.f32 %v204_v17, 0.0  ;;  %v206_v25 = vadd.f32 %v150_v23, %v94_v22  ;;  %v151_v27 = vld [vmem:[#allocation5 + $0x1b8] sm:$0x1]  ;;  %315 = vst [vmem:[#allocation7 + $0x198] sm:$0x1] %v259_v20 }
  0x4b   :  { %v261_v28 = vmax.f32 %v205_v21, 0.0  ;;  %v207_v29 = vadd.f32 %v151_v27, %v95_v26 }
  0x4c   :  { %316 = vst [vmem:[#allocation7 + $0x1a0] sm:$0x1] %v260_v24  ;;  %v262_v30 = vmax.f32 %v206_v25, 0.0 }
  0x4d   :  { %317 = vst [vmem:[#allocation7 + $0x1a8] sm:$0x1] %v261_v28  ;;  %v263_v31 = vmax.f32 %v207_v29, 0.0 }
  0x4e   :  { %318 = vst [vmem:[#allocation7 + $0x1b0] sm:$0x1] %v262_v30 }
  0x4f   :  { %319 = vst [vmem:[#allocation7 + $0x1b8] sm:$0x1] %v263_v31 }
  0x50   :  { %394 = shalt.err (!%p391_p0)
}
  0x51   :  { %331 = dma.vmem_to_hbm [thread:$0]  %s326_s1, 7168, %s449_s2, [#allocation4], %s410_s12, %s410_s12, %s411_s13  }
  0x52   :  { %407 = dma.done.wait [#allocation4], 7168  }
  0x53   :  { %408 = vsyncadd [#allocation4], 4294960128 }
  0x54   :  { %335 = vsyncpa [#allocation3], 1 }
  0x55   :  { %336 = vsyncpa [#allocation6], 1 }
  0x56   :  { %337 = vsyncpa [#allocation4], 1 }

</bundles_post_ra>
